<compile_context>
chip_gen: v6e
topology: v6e:2x2x1
jax: 0.10.0
libtpu: 0.0.40
codegen_flags: <defaults>
</compile_context>

<pallas_src>
import jax
import jax.numpy as jnp
from jax.experimental import pallas as pl
from jax.experimental.pallas import tpu as pltpu

D_IN = 512
D_OUT = 256
EPS = 1e-12  # matches torch.nn.functional.normalize default eps


def _fused_linear_normalize_kernel(x_ref, w_ref, b_ref, o_ref):
    # x_ref: (TILE_B, D_IN)   w_ref: (D_IN, D_OUT)   b_ref: (1, D_OUT)
    # o_ref: (TILE_B, D_OUT)  (branch dim squeezed out via block_shape None)
    x = x_ref[...]
    w = w_ref[...]
    b = b_ref[...]
    # Linear: y = x @ W + b  (MXU, f32 accumulation)
    y = jnp.dot(x, w, preferred_element_type=jnp.float32) + b
    # F.normalize(y, dim=1): y / max(||y||_2, eps)  ==  y * rsqrt(max(sq, eps^2))
    sq = jnp.sum(y * y, axis=-1, keepdims=True)
    inv = jax.lax.rsqrt(jnp.maximum(sq, EPS * EPS))
    o_ref[...] = (y * inv).astype(o_ref.dtype)


def _pick_tile_b(batch):
    """Batch tile: multiple of 8 sublanes, capped so double-buffered tiles +
    the resident 512 KiB weight fit v7x's 64 MiB VMEM with lots of headroom."""
    if batch <= 1024:
        return max(8, ((batch + 7) // 8) * 8)
    return 1024


def fused_linear_normalize(x_stacked, w_t_stacked, b_stacked, *, tile_b=None):
    """x_stacked: (2, B, D_IN), w_t_stacked: (2, D_IN, D_OUT), b_stacked: (2, 1, D_OUT)
    Returns (2, B, D_OUT) of L2-normalized Linear outputs (one row per branch)."""
    n_branch, batch, d_in = x_stacked.shape
    assert d_in == D_IN and w_t_stacked.shape == (n_branch, D_IN, D_OUT)

    tb = tile_b or _pick_tile_b(batch)
    pad = (-batch) % tb
    if pad:
        x_stacked = jnp.pad(x_stacked, ((0, 0), (0, pad), (0, 0)))
    batch_p = batch + pad
    n_tiles = batch_p // tb

    bytes_accessed = 4 * (
        n_branch * batch_p * D_IN          # x tiles in
        + n_branch * D_IN * D_OUT          # weights (resident)
        + n_branch * D_OUT                 # biases
        + n_branch * batch_p * D_OUT       # output tiles
    )

    out = pl.pallas_call(
        _fused_linear_normalize_kernel,
        out_shape=jax.ShapeDtypeStruct((n_branch, batch_p, D_OUT), jnp.float32),
        grid_spec=pltpu.PrefetchScalarGridSpec(
            num_scalar_prefetch=0,
            grid=(n_branch, n_tiles),
            in_specs=[
                # x: new batch tile each step, branch picks the slab
                pl.BlockSpec((None, tb, D_IN), lambda br, i: (br, i, 0)),
                # weight: same block for every batch tile -> stays resident in VMEM
                pl.BlockSpec((None, D_IN, D_OUT), lambda br, i: (br, 0, 0)),
                # bias: resident as well
                pl.BlockSpec((None, 1, D_OUT), lambda br, i: (br, 0, 0)),
            ],
            out_specs=pl.BlockSpec((None, tb, D_OUT), lambda br, i: (br, i, 0)),
        ),
        compiler_params=pltpu.CompilerParams(
            # branch axis + batch tiles are fully independent -> megacore-shardable
            dimension_semantics=("parallel", "parallel"),
        ),
        cost_estimate=pl.CostEstimate(
            flops=2 * n_branch * batch_p * D_IN * D_OUT,
            transcendentals=n_branch * batch_p,
            bytes_accessed=bytes_accessed,
        ),
    )(x_stacked, w_t_stacked, b_stacked)

    if pad:
        out = out[:, :batch, :]
    return out


def init_params(key):
    """Mirrors nn.Linear(512, 256) init; weights are transposed & stacked ONCE
    here so the jitted forward never pays a per-call transpose."""
    k1, k2, k3, k4 = jax.random.split(key, 4)
    bound = float(D_IN) ** -0.5
    img_w = jax.random.uniform(k1, (D_OUT, D_IN), jnp.float32, -bound, bound)
    img_b = jax.random.uniform(k2, (D_OUT,), jnp.float32, -bound, bound)
    txt_w = jax.random.uniform(k3, (D_OUT, D_IN), jnp.float32, -bound, bound)
    txt_b = jax.random.uniform(k4, (D_OUT,), jnp.float32, -bound, bound)
    # One-time layout conversion: (out, in) -> (in, out), stacked over branch.
    w_t = jnp.stack([img_w.T, txt_w.T], axis=0)          # (2, D_IN, D_OUT)
    b = jnp.stack([img_b, txt_b], axis=0)[:, None, :]    # (2, 1, D_OUT)
    return {
        "encoders": {"w_t": w_t, "b": b},
        "logit_scale": jnp.float32(1.0),
    }


@jax.jit
def dummy_model_forward(params, images, texts):
    # TODO(synk): optionally cast x / W to bf16 on v6e/v7x for extra MXU + HBM
    # throughput; kept f32 here to match the 1e-5 torch-reference tolerance.
    x = jnp.stack([images, texts], axis=0)  # (2, B, D_IN)
    embeds = fused_linear_normalize(
        x, params["encoders"]["w_t"], params["encoders"]["b"]
    )
    return {
        "image_embeds": embeds[0],
        "text_embeds": embeds[1],
        "logit_scale": params["logit_scale"],
    }


if __name__ == "__main__":
    key = jax.random.PRNGKey(0)
    k_params, k_img, k_txt = jax.random.split(key, 3)

    params = init_params(k_params)

    batch = 8
    images = jax.random.normal(k_img, (batch, D_IN), jnp.float32)
    texts = jax.random.normal(k_txt, (batch, D_IN), jnp.float32)

    out = dummy_model_forward(params, images, texts)
    jax.block_until_ready(out)

    # Pure-JAX reference (same math as the PyTorch module).
    def ref_branch(x, w_t, b):
        y = x @ w_t + b
        n = jnp.sqrt(jnp.sum(y * y, axis=1, keepdims=True))
        return y / jnp.maximum(n, EPS)

    ref_img = ref_branch(images, params["encoders"]["w_t"][0],
                         params["encoders"]["b"][0])
    ref_txt = ref_branch(texts, params["encoders"]["w_t"][1],
                         params["encoders"]["b"][1])
    assert out["image_embeds"].shape == (batch, D_OUT)
    assert out["text_embeds"].shape == (batch, D_OUT)
    assert jnp.allclose(out["image_embeds"], ref_img, atol=1e-5, rtol=1e-5)
    assert jnp.allclose(out["text_embeds"], ref_txt, atol=1e-5, rtol=1e-5)
    assert out["logit_scale"].shape == ()

    print("KERNEL_OK")
</pallas_src>

<mosaic_0001>
module attributes {stable_mosaic.version = 11 : i64} {
  func.func @_fused_linear_normalize_kernel(%arg0: i32, %arg1: i32, %arg2: memref<1x8x512xf32, #tpu.memory_space<vmem>>, %arg3: memref<1x512x256xf32, #tpu.memory_space<vmem>>, %arg4: memref<1x1x256xf32, #tpu.memory_space<vmem>>, %arg5: memref<1x8x256xf32, #tpu.memory_space<vmem>>) attributes {dimension_semantics = [#tpu.dimension_semantics<parallel>, #tpu.dimension_semantics<parallel>], iteration_bounds = array<i64: 2, 1>, scalar_prefetch = 0 : i64, scratch_operands = 0 : i64, tpu.core_type = #tpu.core_type<tc>, window_params = [{transform_indices = @transform_0, window_bounds = array<i64: 1, 8, 512>}, {transform_indices = @transform_1, window_bounds = array<i64: 1, 512, 256>}, {transform_indices = @transform_2, window_bounds = array<i64: 1, 1, 256>}, {transform_indices = @transform_3, window_bounds = array<i64: 1, 8, 256>}]} {
    %c0 = arith.constant 0 : index
    %c0_0 = arith.constant 0 : index
    %c0_1 = arith.constant 0 : index
    %0 = vector.load %arg2[%c0, %c0_0, %c0_1] : memref<1x8x512xf32, #tpu.memory_space<vmem>>, vector<1x8x512xf32>
    %1 = vector.shape_cast %0 : vector<1x8x512xf32> to vector<8x512xf32>
    %c0_2 = arith.constant 0 : index
    %c0_3 = arith.constant 0 : index
    %c0_4 = arith.constant 0 : index
    %2 = vector.load %arg3[%c0_2, %c0_3, %c0_4] : memref<1x512x256xf32, #tpu.memory_space<vmem>>, vector<1x512x256xf32>
    %3 = vector.shape_cast %2 : vector<1x512x256xf32> to vector<512x256xf32>
    %c0_5 = arith.constant 0 : index
    %c0_6 = arith.constant 0 : index
    %c0_7 = arith.constant 0 : index
    %4 = vector.load %arg4[%c0_5, %c0_6, %c0_7] : memref<1x1x256xf32, #tpu.memory_space<vmem>>, vector<1x1x256xf32>
    %5 = vector.shape_cast %4 : vector<1x1x256xf32> to vector<1x256xf32>
    %cst = arith.constant dense<0.000000e+00> : vector<8x256xf32>
    %6 = tpu.matmul %1, %3, %cst {dimension_numbers = #tpu.dot_dimension_numbers<[1], [0], [0], [1], [0, 0, 1, 1], [], []>} : vector<8x512xf32>, vector<512x256xf32>, vector<8x256xf32> -> vector<8x256xf32>
    %7 = vector.broadcast %5 : vector<1x256xf32> to vector<8x256xf32>
    %8 = arith.addf %6, %7 : vector<8x256xf32>
    %9 = arith.mulf %8, %8 : vector<8x256xf32>
    %cst_8 = arith.constant dense<0.000000e+00> : vector<8xf32>
    %10 = vector.multi_reduction <add>, %9, %cst_8 [1] : vector<8x256xf32> to vector<8xf32>
    %11 = vector.shape_cast %10 : vector<8xf32> to vector<8x1xf32>
    %cst_9 = arith.constant 1.000000e-24 : f32
    %12 = vector.broadcast %cst_9 : f32 to vector<8x1xf32>
    %13 = arith.maximumf %11, %12 : vector<8x1xf32>
    %14 = math.rsqrt %13 : vector<8x1xf32>
    %15 = vector.broadcast %14 : vector<8x1xf32> to vector<8x256xf32>
    %16 = arith.mulf %8, %15 : vector<8x256xf32>
    %c0_10 = arith.constant 0 : index
    %c0_11 = arith.constant 0 : index
    %c0_12 = arith.constant 0 : index
    %17 = vector.load %arg5[%c0_10, %c0_11, %c0_12] : memref<1x8x256xf32, #tpu.memory_space<vmem>>, vector<1x8x256xf32>
    %18 = vector.shape_cast %17 : vector<1x8x256xf32> to vector<8x256xf32>
    %19 = vector.shape_cast %16 : vector<8x256xf32> to vector<1x8x256xf32>
    tpu.vector_store %arg5[%c0_10, %c0_11, %c0_12], %19 {strides = array<i32>} : memref<1x8x256xf32, #tpu.memory_space<vmem>>, vector<1x8x256xf32>,
    return
  }
  func.func @transform_0(%arg0: i32, %arg1: i32) -> (i32, i32, i32) {
    %c0_i32 = arith.constant 0 : i32
    %c0_i32_0 = arith.constant 0 : i32
    return %arg0, %arg1, %c0_i32 : i32, i32, i32
  }
  func.func @transform_1(%arg0: i32, %arg1: i32) -> (i32, i32, i32) {
    %c0_i32 = arith.constant 0 : i32
    %c0_i32_0 = arith.constant 0 : i32
    %c0_i32_1 = arith.constant 0 : i32
    return %arg0, %c0_i32, %c0_i32_0 : i32, i32, i32
  }
  func.func @transform_2(%arg0: i32, %arg1: i32) -> (i32, i32, i32) {
    %c0_i32 = arith.constant 0 : i32
    %c0_i32_0 = arith.constant 0 : i32
    %c0_i32_1 = arith.constant 0 : i32
    return %arg0, %c0_i32, %c0_i32_0 : i32, i32, i32
  }
  func.func @transform_3(%arg0: i32, %arg1: i32) -> (i32, i32, i32) {
    %c0_i32 = arith.constant 0 : i32
    %c0_i32_0 = arith.constant 0 : i32
    return %arg0, %arg1, %c0_i32 : i32, i32, i32
  }
}

</mosaic_0001>

<bundles_post_ra>
// kernel: dummy_model_forward.1
= control target key start
LH: loop header
LB: loop body
LE: loop exit
PB: predicated region body
PF: predicated region fallthrough
CT: control target
= control target key end

     0   :  { %8 = vsyncpa [#allocation3], 0  ;;  %s1109_s0 = inlined_call_operand.vmem [shape: f32[2,8,512], index: 0, kind: input, shape index: {}]   ;;  %s1110_s1 = inlined_call_operand.hbm [shape: f32[2,512,256], index: 1, kind: input, shape index: {}]   ;;  %s1111_s2 = inlined_call_operand.vmem [shape: f32[2,1,256], index: 2, kind: input, shape index: {}]   ;;  %s1112_s3 = inlined_call_operand.vmem [shape: f32[2,8,256], index: 3, kind: output, shape index: {}]  }
   0x1   :  { %10 = vsyncpa [#allocation3 + $0x1], 0  ;;  %s870_s12 = smov 0   ;;  %s872_s13 = smov 0  }
   0x2   :  { %s874_s14 = smov 0   ;;  %s876_s15 = smov 0  }
   0x3   :  { %s878_s16 = smov 0   ;;  %s880_s17 = smov 0  }
   0x4 LB: > { %s689_s18 = sadd.s32 4294967295, %s845_s17   ;;  %s28_s19 = sadd.s32 1, %s841_s16  ;;  %s845_s17 = sphi %s880_s17, %s16_s17   ;;  %s841_s16 = sphi %s878_s16, %s1120_s16   ;;  %s837_s15 = sphi %s876_s15, %s1119_s15   ;;  %s833_s14 = sphi %s874_s14, %s1118_s14   ;;  %s829_s13 = sphi %s872_s13, %s1117_s13   ;;  %s825_s12 = sphi %s870_s12, %s1116_s12  }
   0x5   : > { %p30_p0 = scmp.ge.s32.totalorder %s28_s19, 2  ;;  %s63_s20 = sadd.s32 1, %s833_s14 }
   0x6   : > { %p70_p1 = scmp.ne.s32.totalorder %s833_s14, %s829_s13  ;;  %p71_p2 = scmp.eq.s32.totalorder %s845_s17, 0 }
   0x7   : > { %s1122_s19 = smov (%p30_p0, %s28_s19), 0  ;;  %p76_p4 = scmp.ne.s32.totalorder %s829_s13, %s825_s12 }
   0x8   : > { %p906_p3 = por %p71_p2, %p70_p1  ;;  %s60_s22 = ssub.s32 %s841_s16, %s1122_s19 }
   0x9   : > { %p77_p5 = scmp.eq.s32.totalorder %s689_s18, 0  ;;  %p61_p6 = scmp.eq.s32.totalorder %s60_s22, 0 }
   0xa   : > { %p714_p8 = scmp.lt.s32.totalorder %s845_s17, 2  ;;  %s166_s25 = sand.u32 1, %s833_s14  }
   0xb   : > { %p913_p7 = por %p77_p5, %p76_p4  ;;  %s705_s26 = sshll.u32 %s841_s16, 14 }
   0xc   : > { %s919_s24 = scalar_select %p61_p6, %s833_s14, %s63_s20  }
   0xd   : > { %s693_s27 = sshll.u32 %s166_s25, 10  ;;  %s176_s30 = scalar_lea.hbm %s1110_s1, %s705_s26 }
   0xe   : > { %s170_s4 = scalar_lea.vmem [#allocation2], %s693_s27  ;;  %p928_p9 = pnand %p714_p8, %p906_p3 }
   0xf   : > { %s177_s5 = sshll.u32 %s170_s4, 4  ;;  %s167_s7 = scalar_lea.sflag [#allocation3], %s166_s25  ;;  %s178_s5 = int_to_ptr.vmem [resolvable:$true] %s177_s5 }
  0x10   : > { %p769_p10 = pneg %p928_p9  ;;  %s780_s8 = scalar_lea.vmem %s178_s5, 16384 }
  0x11   : > { %p781_p11 = scmp.ne.s32.totalorder %s178_s5, %s780_s8  ;;  %s847_s9 = smov [#allocation2]  }
  0x12   : > { %s785_s10 = sshll.u32 %s847_s9, 4  ;;  %s786_s10 = int_to_ptr.vmem [resolvable:$false] %s785_s10 }
  0x13   : > { %p783_p12 = pnand %p781_p11, %p769_p10  ;;  %s787_s11 = scalar_lea.vmem %s786_s10, 32768 }
  0x14   : > { %p788_p0 = scmp.lt.s32.totalorder %s178_s5, %s786_s10  ;;  %p789_p1 = scmp.lt.s32.totalorder %s787_s11, %s780_s8 }
  0x15   : > { %p784_p13 = pneg %p783_p12 }
  0x16   : > { %p790_p2 = por %p789_p1, %p788_p0 }
  0x18   : > { %p791_p3 = pnand %p790_p2, %p784_p13 }
  0x1a   : > { %794 = shalt.err (!%p791_p3)
}
  0x1b   : > { %s848_s12 = smov 256   ;;  %s849_s18 = smov 16  }
  0x1c   : > { %713 = dma.hbm_to_vmem [thread:$0]  (!%p928_p9), %s176_s30, 16384, %s178_s5, %s167_s7, %s848_s12, %s848_s12, %s849_s18  }
  0x1d   : > { %p696_p4 = scmp.ge.s32.totalorder %s845_s17, 1  ;;  %p192_p5 = scmp.lt.s32.totalorder %s845_s17, 3 }
  0x1f   : > { %p193_p6 = pnand %p696_p4, %p192_p5 }
  0x20   : > { %s198_s20 = sand.u32 (!%p193_p6), 1, %s829_s13  }
  0x21   : > { %196 = sbr.rel (%p193_p6) target bundleno = 465 (0x1d1), region = 32  ;;  %s697_s21 = sshll.u32 (!%p193_p6), %s198_s20, 10 }
  0x22   : > { %s199_s22 = scalar_lea.sflag (!%p193_p6), [#allocation3], %s198_s20  ;;  %s939_s25 = scalar_lea.vmem (!%p193_p6), [#allocation2], %s697_s21 }
  0x26   : > { %820 = dma.done.wait (%p913_p7), %s199_s22, 16384  }
  0x27   : > { %822 = vsyncadd (%p913_p7), %s199_s22, 4294950912  ;;  %v299_v0 = vld [vmem:[%s939_s25 + $0xf8] sm:$0xff]  ;;  %v298_v2 = vld [vmem:[%s939_s25 + $0xf0] sm:$0xff]  ;;  %p242_p7 = scmp.lt.s32.totalorder %s837_s15, 1 }
  0x28   : > { %v363_v1 = vld [vmem:[%s939_s25 + $0x2f8] sm:$0xff]  ;;  %408 = vmatprep.subr.mxu0 %v299_v0  ;;  %v362_v3 = vld [vmem:[%s939_s25 + $0x2f0] sm:$0xff]  ;;  %v297_v4 = vld [vmem:[%s939_s25 + $0xe8] sm:$0xff] }
  0x29   : > { %479 = vmatprep.subr.mxu1 %v363_v1  ;;  %v361_v5 = vld [vmem:[%s939_s25 + $0x2e8] sm:$0xff]  ;;  %409 = vmatpush1.msra.mxu0 %v298_v2  ;;  %v296_v6 = vld [vmem:[%s939_s25 + $0xe0] sm:$0xff]  ;;  %v295_v8 = vld [vmem:[%s939_s25 + $0xd8] sm:$0xff]  ;;  %s1124_s15 = smov (!%p242_p7, %s837_s15), 1 }
  0x2a   : > { %480 = vmatpush1.msra.mxu1 %v362_v3  ;;  %v360_v7 = vld [vmem:[%s939_s25 + $0x2e0] sm:$0xff]  ;;  %410 = vmatprep.subr.mxu0 %v297_v4  ;;  %v359_v9 = vld [vmem:[%s939_s25 + $0x2d8] sm:$0xff]  ;;  %v294_v10 = vld [vmem:[%s939_s25 + $0xd0] sm:$0xff]  ;;  %s706_s23 = sshll.u32 %s1124_s15, 5  ;;  %s700_s29 = sshll.u32 %s1124_s15, 1 }
  0x2b   : > { %481 = vmatprep.subr.mxu1 %v361_v5  ;;  %v358_v11 = vld [vmem:[%s939_s25 + $0x2d0] sm:$0xff]  ;;  %411 = vmatpush1.msra.mxu0 %v296_v6  ;;  %v293_v12 = vld [vmem:[%s939_s25 + $0xc8] sm:$0xff]  ;;  %v292_v14 = vld [vmem:[%s939_s25 + $0xc0] sm:$0xff]  ;;  %s250_s28 = scalar_lea.vmem %s1109_s0, %s706_s23  ;;  %s254_s5 = scalar_lea.vmem %s1111_s2, %s700_s29 }
  0x2c   : > { %482 = vmatpush1.msra.mxu1 %v360_v7  ;;  %v357_v13 = vld [vmem:[%s939_s25 + $0x2c8] sm:$0xff]  ;;  %412 = vmatprep.subr.mxu0 %v295_v8  ;;  %v356_v15 = vld [vmem:[%s939_s25 + $0x2c0] sm:$0xff]  ;;  %v291_v16 = vld [vmem:[%s939_s25 + $0xb8] sm:$0xff]  ;;  %s707_s6 = sshll.u32 %s1124_s15, 4 }
  0x2d   : > { %483 = vmatprep.subr.mxu1 %v359_v9  ;;  %413 = vmatpush1.msra.mxu0 %v294_v10  ;;  %v355_v17 = vld [vmem:[%s939_s25 + $0x2b8] sm:$0xff]  ;;  %v290_v18 = vld [vmem:[%s939_s25 + $0xb0] sm:$0xff]  ;;  %v289_v20 = vld [vmem:[%s939_s25 + $0xa8] sm:$0xff]  ;;  %s263_s9 = scalar_lea.vmem %s1112_s3, %s707_s6 }
  0x2e   : > { %484 = vmatpush1.msra.mxu1 %v358_v11  ;;  %414 = vmatprep.subr.mxu0 %v293_v12  ;;  %v354_v19 = vld [vmem:[%s939_s25 + $0x2b0] sm:$0xff]  ;;  %v353_v21 = vld [vmem:[%s939_s25 + $0x2a8] sm:$0xff]  ;;  %v288_v22 = vld [vmem:[%s939_s25 + $0xa0] sm:$0xff] }
  0x2f   : > { %485 = vmatprep.subr.mxu1 %v357_v13  ;;  %415 = vmatpush1.msra.mxu0 %v292_v14  ;;  %v352_v23 = vld [vmem:[%s939_s25 + $0x2a0] sm:$0xff]  ;;  %v287_v24 = vld [vmem:[%s939_s25 + $0x98] sm:$0xff]  ;;  %v286_v26 = vld [vmem:[%s939_s25 + $0x90] sm:$0xff] }
  0x30   : > { %486 = vmatpush1.msra.mxu1 %v356_v15  ;;  %416 = vmatprep.subr.mxu0 %v291_v16  ;;  %v351_v25 = vld [vmem:[%s939_s25 + $0x298] sm:$0xff]  ;;  %v350_v27 = vld [vmem:[%s939_s25 + $0x290] sm:$0xff]  ;;  %v285_v28 = vld [vmem:[%s939_s25 + $0x88] sm:$0xff] }
  0x31   : > { %487 = vmatprep.subr.mxu1 %v355_v17  ;;  %417 = vmatpush1.msra.mxu0 %v290_v18  ;;  %v349_v29 = vld [vmem:[%s939_s25 + $0x288] sm:$0xff]  ;;  %v284_v30 = vld [vmem:[%s939_s25 + $0x80] sm:$0xff]  ;;  %v283_v32 = vld [vmem:[%s939_s25 + $0x78] sm:$0xff] }
  0x32   : > { %488 = vmatpush1.msra.mxu1 %v354_v19  ;;  %418 = vmatprep.subr.mxu0 %v289_v20  ;;  %v348_v31 = vld [vmem:[%s939_s25 + $0x280] sm:$0xff]  ;;  %v347_v33 = vld [vmem:[%s939_s25 + $0x278] sm:$0xff]  ;;  %v282_v34 = vld [vmem:[%s939_s25 + $0x70] sm:$0xff] }
  0x33   : > { %489 = vmatprep.subr.mxu1 %v353_v21  ;;  %419 = vmatpush1.msra.mxu0 %v288_v22  ;;  %v346_v35 = vld [vmem:[%s939_s25 + $0x270] sm:$0xff]  ;;  %v281_v36 = vld [vmem:[%s939_s25 + $0x68] sm:$0xff]  ;;  %v280_v38 = vld [vmem:[%s939_s25 + $0x60] sm:$0xff] }
  0x34   : > { %490 = vmatpush1.msra.mxu1 %v352_v23  ;;  %420 = vmatprep.subr.mxu0 %v287_v24  ;;  %v345_v37 = vld [vmem:[%s939_s25 + $0x268] sm:$0xff]  ;;  %v344_v39 = vld [vmem:[%s939_s25 + $0x260] sm:$0xff]  ;;  %v279_v40 = vld [vmem:[%s939_s25 + $0x58] sm:$0xff] }
  0x35   : > { %491 = vmatprep.subr.mxu1 %v351_v25  ;;  %421 = vmatpush1.msra.mxu0 %v286_v26  ;;  %v343_v41 = vld [vmem:[%s939_s25 + $0x258] sm:$0xff]  ;;  %v278_v42 = vld [vmem:[%s939_s25 + $0x50] sm:$0xff]  ;;  %v277_v44 = vld [vmem:[%s939_s25 + $0x48] sm:$0xff] }
  0x36   : > { %492 = vmatpush1.msra.mxu1 %v350_v27  ;;  %422 = vmatprep.subr.mxu0 %v285_v28  ;;  %v342_v43 = vld [vmem:[%s939_s25 + $0x250] sm:$0xff]  ;;  %v341_v45 = vld [vmem:[%s939_s25 + $0x248] sm:$0xff]  ;;  %v276_v46 = vld [vmem:[%s939_s25 + $0x40] sm:$0xff] }
  0x37   : > { %493 = vmatprep.subr.mxu1 %v349_v29  ;;  %423 = vmatpush1.msra.mxu0 %v284_v30  ;;  %v340_v47 = vld [vmem:[%s939_s25 + $0x240] sm:$0xff]  ;;  %v275_v48 = vld [vmem:[%s939_s25 + $0x38] sm:$0xff]  ;;  %v274_v50 = vld [vmem:[%s939_s25 + $0x30] sm:$0xff] }
  0x38   : > { %494 = vmatpush1.msra.mxu1 %v348_v31  ;;  %424 = vmatprep.subr.mxu0 %v283_v32  ;;  %v339_v49 = vld [vmem:[%s939_s25 + $0x238] sm:$0xff]  ;;  %v338_v51 = vld [vmem:[%s939_s25 + $0x230] sm:$0xff]  ;;  %v273_v52 = vld [vmem:[%s939_s25 + $0x28] sm:$0xff] }
  0x39   : > { %495 = vmatprep.subr.mxu1 %v347_v33  ;;  %425 = vmatpush1.msra.mxu0 %v282_v34  ;;  %v337_v53 = vld [vmem:[%s939_s25 + $0x228] sm:$0xff]  ;;  %v272_v54 = vld [vmem:[%s939_s25 + $0x20] sm:$0xff]  ;;  %v271_v56 = vld [vmem:[%s939_s25 + $0x18] sm:$0xff] }
  0x3a   : > { %496 = vmatpush1.msra.mxu1 %v346_v35  ;;  %426 = vmatprep.subr.mxu0 %v281_v36  ;;  %v336_v55 = vld [vmem:[%s939_s25 + $0x220] sm:$0xff]  ;;  %v335_v57 = vld [vmem:[%s939_s25 + $0x218] sm:$0xff]  ;;  %v270_v58 = vld [vmem:[%s939_s25 + $0x10] sm:$0xff] }
  0x3b   : > { %497 = vmatprep.subr.mxu1 %v345_v37  ;;  %427 = vmatpush1.msra.mxu0 %v280_v38  ;;  %v334_v59 = vld [vmem:[%s939_s25 + $0x210] sm:$0xff]  ;;  %v269_v60 = vld [vmem:[%s939_s25 + $0x8] sm:$0xff]  ;;  %v268_v62 = vld [vmem:[%s939_s25] sm:$0xff] }
  0x3c   : > { %498 = vmatpush1.msra.mxu1 %v344_v39  ;;  %428 = vmatprep.subr.mxu0 %v279_v40  ;;  %v333_v61 = vld [vmem:[%s939_s25 + $0x208] sm:$0xff]  ;;  %v332_v63 = vld [vmem:[%s939_s25 + $0x200] sm:$0xff]  ;;  %v331_v0 = vld [vmem:[%s939_s25 + $0x1f8] sm:$0xff] }
  0x3d   : > { %499 = vmatprep.subr.mxu1 %v343_v41  ;;  %429 = vmatpush1.msra.mxu0 %v278_v42  ;;  %v395_v1 = vld [vmem:[%s939_s25 + $0x3f8] sm:$0xff]  ;;  %v330_v2 = vld [vmem:[%s939_s25 + $0x1f0] sm:$0xff]  ;;  %v329_v4 = vld [vmem:[%s939_s25 + $0x1e8] sm:$0xff] }
  0x3e   : > { %500 = vmatpush1.msra.mxu1 %v342_v43  ;;  %430 = vmatprep.subr.mxu0 %v277_v44  ;;  %v394_v3 = vld [vmem:[%s939_s25 + $0x3f0] sm:$0xff]  ;;  %v393_v5 = vld [vmem:[%s939_s25 + $0x3e8] sm:$0xff]  ;;  %v328_v6 = vld [vmem:[%s939_s25 + $0x1e0] sm:$0xff] }
  0x3f   : > { %501 = vmatprep.subr.mxu1 %v341_v45  ;;  %431 = vmatpush1.msra.mxu0 %v276_v46  ;;  %v392_v7 = vld [vmem:[%s939_s25 + $0x3e0] sm:$0xff]  ;;  %v327_v8 = vld [vmem:[%s939_s25 + $0x1d8] sm:$0xff]  ;;  %v326_v10 = vld [vmem:[%s939_s25 + $0x1d0] sm:$0xff] }
  0x40   : > { %502 = vmatpush1.msra.mxu1 %v340_v47  ;;  %432 = vmatprep.subr.mxu0 %v275_v48  ;;  %v391_v9 = vld [vmem:[%s939_s25 + $0x3d8] sm:$0xff]  ;;  %v390_v11 = vld [vmem:[%s939_s25 + $0x3d0] sm:$0xff]  ;;  %v325_v12 = vld [vmem:[%s939_s25 + $0x1c8] sm:$0xff] }
  0x41   : > { %503 = vmatprep.subr.mxu1 %v339_v49  ;;  %433 = vmatpush1.msra.mxu0 %v274_v50  ;;  %v389_v13 = vld [vmem:[%s939_s25 + $0x3c8] sm:$0xff]  ;;  %v324_v14 = vld [vmem:[%s939_s25 + $0x1c0] sm:$0xff]  ;;  %v323_v16 = vld [vmem:[%s939_s25 + $0x1b8] sm:$0xff] }
  0x42   : > { %504 = vmatpush1.msra.mxu1 %v338_v51  ;;  %434 = vmatprep.subr.mxu0 %v273_v52  ;;  %v388_v15 = vld [vmem:[%s939_s25 + $0x3c0] sm:$0xff]  ;;  %v387_v17 = vld [vmem:[%s939_s25 + $0x3b8] sm:$0xff]  ;;  %v322_v18 = vld [vmem:[%s939_s25 + $0x1b0] sm:$0xff] }
  0x43   : > { %505 = vmatprep.subr.mxu1 %v337_v53  ;;  %435 = vmatpush1.msra.mxu0 %v272_v54  ;;  %v386_v19 = vld [vmem:[%s939_s25 + $0x3b0] sm:$0xff]  ;;  %v321_v20 = vld [vmem:[%s939_s25 + $0x1a8] sm:$0xff]  ;;  %v320_v22 = vld [vmem:[%s939_s25 + $0x1a0] sm:$0xff] }
  0x44   : > { %506 = vmatpush1.msra.mxu1 %v336_v55  ;;  %436 = vmatprep.subr.mxu0 %v271_v56  ;;  %v385_v21 = vld [vmem:[%s939_s25 + $0x3a8] sm:$0xff]  ;;  %v384_v23 = vld [vmem:[%s939_s25 + $0x3a0] sm:$0xff]  ;;  %v319_v24 = vld [vmem:[%s939_s25 + $0x198] sm:$0xff] }
  0x45   : > { %507 = vmatprep.subr.mxu1 %v335_v57  ;;  %437 = vmatpush1.msra.mxu0 %v270_v58  ;;  %v383_v25 = vld [vmem:[%s939_s25 + $0x398] sm:$0xff]  ;;  %v318_v26 = vld [vmem:[%s939_s25 + $0x190] sm:$0xff]  ;;  %v317_v28 = vld [vmem:[%s939_s25 + $0x188] sm:$0xff] }
  0x46   : > { %508 = vmatpush1.msra.mxu1 %v334_v59  ;;  %438 = vmatprep.subr.mxu0 %v269_v60  ;;  %v382_v27 = vld [vmem:[%s939_s25 + $0x390] sm:$0xff]  ;;  %v381_v29 = vld [vmem:[%s939_s25 + $0x388] sm:$0xff]  ;;  %v316_v30 = vld [vmem:[%s939_s25 + $0x180] sm:$0xff] }
  0x47   : > { %509 = vmatprep.subr.mxu1 %v333_v61  ;;  %439 = vmatpush1.msra.mxu0 %v268_v62  ;;  %v380_v31 = vld [vmem:[%s939_s25 + $0x380] sm:$0xff]  ;;  %v315_v32 = vld [vmem:[%s939_s25 + $0x178] sm:$0xff]  ;;  %v314_v34 = vld [vmem:[%s939_s25 + $0x170] sm:$0xff] }
  0x48   : > { %510 = vmatpush1.msra.mxu1 %v332_v63  ;;  %440 = vmatprep.subr.mxu0 %v331_v0  ;;  %v379_v33 = vld [vmem:[%s939_s25 + $0x378] sm:$0xff]  ;;  %v378_v35 = vld [vmem:[%s939_s25 + $0x370] sm:$0xff]  ;;  %v313_v36 = vld [vmem:[%s939_s25 + $0x168] sm:$0xff] }
  0x49   : > { %511 = vmatprep.subr.mxu1 %v395_v1  ;;  %441 = vmatpush2.msra.mxu0 %v330_v2  ;;  %v377_v37 = vld [vmem:[%s939_s25 + $0x368] sm:$0xff]  ;;  %v312_v38 = vld [vmem:[%s939_s25 + $0x160] sm:$0xff]  ;;  %v311_v40 = vld [vmem:[%s939_s25 + $0x158] sm:$0xff] }
  0x4a   : > { %512 = vmatpush2.msra.mxu1 %v394_v3  ;;  %442 = vmatprep.subr.mxu0 %v329_v4  ;;  %v376_v39 = vld [vmem:[%s939_s25 + $0x360] sm:$0xff]  ;;  %v375_v41 = vld [vmem:[%s939_s25 + $0x358] sm:$0xff]  ;;  %v310_v42 = vld [vmem:[%s939_s25 + $0x150] sm:$0xff]  ;;  %v398_v4 = vlaneseq }
  0x4b   : > { %513 = vmatprep.subr.mxu1 %v393_v5  ;;  %443 = vmatpush2.msra.mxu0 %v328_v6  ;;  %v374_v43 = vld [vmem:[%s939_s25 + $0x350] sm:$0xff]  ;;  %v309_v44 = vld [vmem:[%s939_s25 + $0x148] sm:$0xff]  ;;  %v308_v46 = vld [vmem:[%s939_s25 + $0x140] sm:$0xff] }
  0x4c   : > { %514 = vmatpush2.msra.mxu1 %v392_v7  ;;  %444 = vmatprep.subr.mxu0 %v327_v8  ;;  %v373_v45 = vld [vmem:[%s939_s25 + $0x348] sm:$0xff]  ;;  %v372_v47 = vld [vmem:[%s939_s25 + $0x340] sm:$0xff]  ;;  %v307_v48 = vld [vmem:[%s939_s25 + $0x138] sm:$0xff]  ;;  %v399_v5 = vshrl.u32 %v398_v4, 7 }
  0x4d   : > { %515 = vmatprep.subr.mxu1 %v391_v9  ;;  %445 = vmatpush2.msra.mxu0 %v326_v10  ;;  %v371_v49 = vld [vmem:[%s939_s25 + $0x338] sm:$0xff]  ;;  %v306_v50 = vld [vmem:[%s939_s25 + $0x130] sm:$0xff]  ;;  %v305_v52 = vld [vmem:[%s939_s25 + $0x128] sm:$0xff] }
  0x4e   : > { %516 = vmatpush2.msra.mxu1 %v390_v11  ;;  %446 = vmatprep.subr.mxu0 %v325_v12  ;;  %v370_v51 = vld [vmem:[%s939_s25 + $0x330] sm:$0xff]  ;;  %v369_v53 = vld [vmem:[%s939_s25 + $0x328] sm:$0xff]  ;;  %v304_v54 = vld [vmem:[%s939_s25 + $0x120] sm:$0xff]  ;;  %v400_v6 = vsub.s32 0, %v399_v5  ;;  %v404_v8 = vsub.s32 1, %v399_v5 }
  0x4f   : > { %517 = vmatprep.subr.mxu1 %v389_v13  ;;  %447 = vmatpush2.msra.mxu0 %v324_v14  ;;  %v368_v55 = vld [vmem:[%s939_s25 + $0x320] sm:$0xff]  ;;  %v303_v56 = vld [vmem:[%s939_s25 + $0x118] sm:$0xff]  ;;  %v302_v58 = vld [vmem:[%s939_s25 + $0x110] sm:$0xff] }
  0x50   : > { %518 = vmatpush2.msra.mxu1 %v388_v15  ;;  %448 = vmatprep.subr.mxu0 %v323_v16  ;;  %v367_v57 = vld [vmem:[%s939_s25 + $0x318] sm:$0xff]  ;;  %v366_v59 = vld [vmem:[%s939_s25 + $0x310] sm:$0xff]  ;;  %v301_v60 = vld [vmem:[%s939_s25 + $0x108] sm:$0xff] }
  0x51   : > { %519 = vmatprep.subr.mxu1 %v387_v17  ;;  %449 = vmatpush2.msra.mxu0 %v322_v18  ;;  %v365_v61 = vld [vmem:[%s939_s25 + $0x308] sm:$0xff]  ;;  %v300_v62 = vld [vmem:[%s939_s25 + $0x100] sm:$0xff]  ;;  %v267_v1 = vld [vmem:[%s250_s28 + $0x18] sm:$0xff] }
  0x52   : > { %520 = vmatpush2.msra.mxu1 %v386_v19  ;;  %450 = vmatprep.subr.mxu0 %v321_v20  ;;  %v265_v63 = vld [vmem:[%s250_s28 + $0x8] sm:$0xff]  ;;  %v364_v0 = vld [vmem:[%s939_s25 + $0x300] sm:$0xff]  ;;  %v266_v3 = vld [vmem:[%s250_s28 + $0x10] sm:$0xff] }
  0x53   : > { %521 = vmatprep.subr.mxu1 %v385_v21  ;;  %451 = vmatpush2.msra.mxu0 %v320_v22  ;;  %v264_v2 = vld [vmem:[%s250_s28] sm:$0xff] }
  0x54   : > { %522 = vmatpush2.msra.mxu1 %v384_v23  ;;  %452 = vmatprep.subr.mxu0 %v319_v24  ;;  %v396_v7 = vld [vmem:[%s254_s5] sm:$0x3] }
  0x55   : > { %523 = vmatprep.subr.mxu1 %v383_v25  ;;  %453 = vmatpush2.msra.mxu0 %v318_v26  ;;  %v401_v9 = vrot.slane %v396_v7, %v400_v6  ;;  %v405_v10 = vrot.slane %v396_v7, %v404_v8 }
  0x56   : > { %524 = vmatpush2.msra.mxu1 %v382_v27  ;;  %454 = vmatprep.subr.mxu0 %v317_v28 }
  0x57   : > { %525 = vmatprep.subr.mxu1 %v381_v29  ;;  %455 = vmatpush2.msra.mxu0 %v316_v30 }
  0x58   : > { %526 = vmatpush2.msra.mxu1 %v380_v31  ;;  %456 = vmatprep.subr.mxu0 %v315_v32 }
  0x59   : > { %527 = vmatprep.subr.mxu1 %v379_v33  ;;  %457 = vmatpush2.msra.mxu0 %v314_v34 }
  0x5a   : > { %528 = vmatpush2.msra.mxu1 %v378_v35  ;;  %458 = vmatprep.subr.mxu0 %v313_v36 }
  0x5b   : > { %529 = vmatprep.subr.mxu1 %v377_v37  ;;  %459 = vmatpush2.msra.mxu0 %v312_v38 }
  0x5c   : > { %530 = vmatpush2.msra.mxu1 %v376_v39  ;;  %460 = vmatprep.subr.mxu0 %v311_v40 }
  0x5d   : > { %531 = vmatprep.subr.mxu1 %v375_v41  ;;  %461 = vmatpush2.msra.mxu0 %v310_v42 }
  0x5e   : > { %532 = vmatpush2.msra.mxu1 %v374_v43  ;;  %462 = vmatprep.subr.mxu0 %v309_v44 }
  0x5f   : > { %533 = vmatprep.subr.mxu1 %v373_v45  ;;  %463 = vmatpush2.msra.mxu0 %v308_v46 }
  0x60   : > { %534 = vmatpush2.msra.mxu1 %v372_v47  ;;  %464 = vmatprep.subr.mxu0 %v307_v48 }
  0x61   : > { %535 = vmatprep.subr.mxu1 %v371_v49  ;;  %465 = vmatpush2.msra.mxu0 %v306_v50 }
  0x62   : > { %536 = vmatpush2.msra.mxu1 %v370_v51  ;;  %466 = vmatprep.subr.mxu0 %v305_v52 }
  0x63   : > { %537 = vmatprep.subr.mxu1 %v369_v53  ;;  %467 = vmatpush2.msra.mxu0 %v304_v54 }
  0x64   : > { %538 = vmatpush2.msra.mxu1 %v368_v55  ;;  %468 = vmatprep.subr.mxu0 %v303_v56 }
  0x65   : > { %539 = vmatprep.subr.mxu1 %v367_v57  ;;  %469 = vmatpush2.msra.mxu0 %v302_v58 }
  0x66   : > { %540 = vmatpush2.msra.mxu1 %v366_v59  ;;  %470 = vmatprep.subr.mxu0 %v301_v60 }
  0x67   : > { %541 = vmatprep.subr.mxu1 %v365_v61  ;;  %471 = vmatpush2.msra.mxu0 %v300_v62 }
  0x68   : > { %472 = vmatprep.mubr.f32.mxu0 %v265_v63  ;;  %542 = vmatpush2.msra.mxu1 %v364_v0 }
  0x69   : > { %543 = vmatprep.mubr.f32.mxu1 %v267_v1  ;;  %473 = vmatmul.mubr.f32.vlgmr.msra.gmra.mxu0 %v264_v2 }
  0x6a   : > { %544 = vmatmul.mubr.f32.vlgmr.msra.gmra.mxu1 %v266_v3 }
 0x129   : > { %v474_v11 = vpop.f32.mrf.mxu0 }
 0x12a   : > { %v545_v12 = vpop.f32.mrf.mxu1  ;;  %v475_v13 = vadd.f32 %v474_v11, %v401_v9 }
 0x12b   : > { %v476_v14 = vpop.f32.mrf.mxu0 }
 0x12c   : > { %v546_v15 = vadd.f32 %v545_v12, %v475_v13  ;;  %v477_v16 = vadd.f32 %v476_v14, %v405_v10  ;;  %v547_v17 = vpop.f32.mrf.mxu1 }
 0x12e   : > { %v548_v18 = vadd.f32 %v547_v17, %v477_v16  ;;  %v550_v19 = vmul.f32 %v546_v15, %v546_v15 }
 0x130   : > { %v551_v20 = vmul.f32 %v548_v18, %v548_v18 }
 0x132   : > { %v552_v21 = vadd.f32 %v551_v20, %v550_v19 }
 0x134   : > { %553 = vadd.xlane.f32.xlu0 %v552_v21 }
 0x1bd   : > { %v554_v22 = vpop.xlane.xlu0 %553 }
 0x1be   : > { %v555_v23 = vmax.f32 %v554_v22, 1e-24 }
 0x1c0   : > { %765 = vrsqrt.f32 %v555_v23 }
 0x1cd   : > { %v766_v24 = vpop.eup %765 }
 0x1ce   : > { %v557_v25 = vmul.f32 %v766_v24, %v546_v15  ;;  %v558_v26 = vmul.f32 %v766_v24, %v548_v18 }
 0x1d0   : > { %559 = vst [vmem:[%s263_s9] sm:$0xff] %v557_v25  ;;  %560 = vst [vmem:[%s263_s9 + $0x8] sm:$0xff] %v558_v26 }
 0x1d1 PF: > { %s16_s17 = sadd.s32 1, %s845_s17   ;;  %s1116_s12 = smov %s829_s13 }
 0x1d2   : > { %p13_p8 = scmp.ge.s32.totalorder %s16_s17, 4   ;;  %s1117_s13 = smov %s833_s14 }
 0x1d3   : > { %s1118_s14 = smov %s919_s24  ;;  %s1119_s15 = smov %s841_s16 }
 0x1d4   : > { %s1120_s16 = smov %s1122_s19  ;;  %15 = sbr.rel (!%p13_p8) target bundleno = 4 (0x4), region = 78 }
 0x1d9   :  { %590 = vsyncpa [#allocation3], 1 }
 0x1da   :  { %592 = vsyncpa [#allocation3 + $0x1], 1 }

</bundles_post_ra>
